<compile_context>
chip_gen: v7x
topology: tpu7x:2x2x1
jax: 0.10.0
libtpu: 0.0.40
codegen_flags: <defaults>
</compile_context>

<pallas_src>
import functools
import math

import numpy as np
import jax
import jax.numpy as jnp
from jax import lax
from jax.experimental import pallas as pl
from jax.experimental.pallas import tpu as pltpu


def _round_up(x, m):
    return (x + m - 1) // m * m


def _vmem_budget():
    """(physical VMEM, per-tile working-set target, compiler vmem limit)."""
    cap = 64 << 20                      # conservative fallback == v7x
    try:
        info = pltpu.get_tpu_info()
        cap = int(getattr(info, "vmem_capacity_bytes", cap))
    except Exception:
        pass
    target = max(16 << 20, min(int(cap * 0.40), 80 << 20))
    limit = max(32 << 20, min(int(cap * 0.75), 100 << 20))
    return target, limit


def _pick_pair_tile(n_pairs, dp, ckp2, mm_bytes, budget):
    """Largest pair-tile whose modeled VMEM working set fits `budget`."""
    weights = (ckp2 * 2 * dp + dp * dp) * mm_bytes * 2 + 4 * 2 * dp * 4 * 2

    def est(trh):
        io = 2 * trh * ckp2 * mm_bytes + 2 * trh * dp * 4   # dbl-buffered in/out
        tmp = 10 * trh * dp * 4                             # live f32 temporaries
        return weights + io + tmp

    trh = 8
    for cand in (2048, 1024, 512, 256, 128, 64, 32, 16, 8):
        if est(cand) <= budget:
            trh = cand
            break
    # keep >= 2 grid steps so the "parallel" axis can use both v7x TensorCores
    while trh > 8 and -(-n_pairs // trh) < 2:
        trh //= 2
    return trh


def _sigmoid(z):
    # single EUP transcendental per call (tanh); avoids the VALU reciprocal.
    return 0.5 + 0.5 * jnp.tanh(0.5 * z)


def _conv_stats_kernel(p_ref, wbd_ref, b2_ref, stats_ref):
    """Pass 1: block-diag Conv1d(4->D) on merged even/odd rows; sum & sum-sq."""
    y = jnp.dot(p_ref[...], wbd_ref[...],
                preferred_element_type=jnp.float32) + b2_ref[...]   # (TRH, 2Dp)
    stats_ref[0:1, :] = jnp.sum(y, axis=0, keepdims=True)
    stats_ref[1:2, :] = jnp.sum(y * y, axis=0, keepdims=True)
    # rows 2..7 of the stats block are never read on the host side.


def _stem_main_kernel(p_ref, wbd_ref, b2_ref, scale2_ref, shift2_ref,
                      wfold_ref, bfold_ref, out_ref, *, dp, mm_dtype):
    """Pass 2: conv -> BN affine -> GELU x2 -> folded 1x1 -> residual -> pool."""
    y = jnp.dot(p_ref[...], wbd_ref[...],
                preferred_element_type=jnp.float32) + b2_ref[...]   # [ye | yo]
    x1 = y * scale2_ref[...] + shift2_ref[...]        # BatchNorm (batch stats)
    x1 = x1 * _sigmoid(1.702 * x1)                    # GELU (sigmoid form, as in spec)
    x1 = x1 * _sigmoid(1.702 * x1)                    # applied twice (per module)
    wf = wfold_ref[...]                               # (Dp, Dp)  (W @ W)^T
    bf = bfold_ref[...]                               # (1, Dp)   W @ b + b
    ze = jnp.dot(x1[:, :dp].astype(mm_dtype), wf,
                 preferred_element_type=jnp.float32) + bf
    zo = jnp.dot(x1[:, dp:].astype(mm_dtype), wf,
                 preferred_element_type=jnp.float32) + bf
    r_e = y[:, :dp] + ze                              # residual, even positions
    r_o = y[:, dp:] + zo                              # residual, odd positions
    # AttentionPool(pool=2) with dirac*2 logits: softmax over the pair reduces
    # to a sigmoid of the scaled difference.
    d = r_e - r_o
    attn = _sigmoid(2.0 * d)
    out_ref[...] = r_o + attn * d


def stem_forward(x_ncl, params, *, pool_size=2, eps=1e-5,
                 matmul_dtype=jnp.bfloat16):
    B, c_in, N = x_ncl.shape
    assert c_in == 4
    # TODO(synk): AttentionPool's remainder-padding/mask branch (N % pool_size
    # != 0) is not implemented; this kernel requires an even sequence length.
    assert pool_size == 2 and N % pool_size == 0
    D, _, K = params["w_conv"].shape
    pad = (K - 1) // 2

    CK = K * c_in                        # 60
    CKp = _round_up(CK, 64)              # per-position contraction, padded
    CKp2 = 2 * CKp                       # merged even+odd contraction (128)
    Dp = _round_up(D, 128)               # lane-dense channel dim
    mm_bytes = jnp.dtype(matmul_dtype).itemsize

    BN_rows = B * N
    n_pairs = BN_rows // 2

    # ---- im2col patches (channels last); even/odd pair merged into one row.
    x_nlc = jnp.transpose(x_ncl, (0, 2, 1)).astype(jnp.float32)            # (B, N, 4)
    xpad = jnp.pad(x_nlc, ((0, 0), (pad, pad), (0, 0)))                    # (B, N+14, 4)
    patches = jnp.stack([xpad[:, k:k + N, :] for k in range(K)], axis=2)   # (B, N, K, 4)
    patches = patches.reshape(B, N, CK)
    patches = jnp.pad(patches, ((0, 0), (0, 0), (0, CKp - CK)))            # (B, N, 64)
    patches = patches.reshape(n_pairs, CKp2).astype(matmul_dtype)          # (pairs, 128)

    # ---- tile sizing / row padding (awkward B*N handled by zero rows).
    budget, vmem_limit = _vmem_budget()
    TRH = _pick_pair_tile(n_pairs, Dp, CKp2, mm_bytes, budget)
    num_tiles = -(-n_pairs // TRH)
    padded_pairs = num_tiles * TRH
    n_pad_pairs = padded_pairs - n_pairs
    if n_pad_pairs:
        patches = jnp.pad(patches, ((0, n_pad_pairs), (0, 0)))

    # ---- weights: channels-last, zero-padded; block-diagonal conv weight.
    w_im2col = jnp.transpose(params["w_conv"], (2, 1, 0)).reshape(CK, D)   # (60, D)
    w_pad = jnp.pad(w_im2col, ((0, CKp - CK), (0, Dp - D))).astype(matmul_dtype)
    zblk = jnp.zeros_like(w_pad)
    w_bd = jnp.concatenate(
        [jnp.concatenate([w_pad, zblk], axis=1),
         jnp.concatenate([zblk, w_pad], axis=1)], axis=0)                  # (128, 2Dp)

    bconv = jnp.pad(params["b_conv"].astype(jnp.float32), (0, Dp - D))     # (Dp,)
    bconv2 = jnp.concatenate([bconv, bconv]).reshape(1, 2 * Dp)
    gamma = jnp.pad(params["bn_gamma"].astype(jnp.float32), (0, Dp - D))
    beta = jnp.pad(params["bn_beta"].astype(jnp.float32), (0, Dp - D))

    # Fold the two identical 1x1 convs (back-to-back affine ops) into one.
    W = params["w_1x1"][:, :, 0].astype(jnp.float32)                       # (Dout, Din)
    b1 = params["b_1x1"].astype(jnp.float32)
    W2 = W @ W
    b2 = W @ b1 + b1
    wfold = jnp.pad(W2.T, ((0, Dp - D), (0, Dp - D))).astype(matmul_dtype) # (Din, Dout)
    bfold = jnp.pad(b2, (0, Dp - D)).reshape(1, Dp)

    cparams = pltpu.CompilerParams(dimension_semantics=("parallel",),
                                   vmem_limit_bytes=int(vmem_limit))
    row_spec = pl.BlockSpec((TRH, CKp2), lambda i: (i, 0))

    def full2(a):
        return pl.BlockSpec(a.shape, lambda i: (0, 0))

    # ---- pass 1: conv + per-tile sum / sum-of-squares (for global BN stats).
    stats = pl.pallas_call(
        _conv_stats_kernel,
        out_shape=jax.ShapeDtypeStruct((num_tiles * 8, 2 * Dp), jnp.float32),
        grid=(num_tiles,),
        in_specs=[row_spec, full2(w_bd), full2(bconv2)],
        out_specs=pl.BlockSpec((8, 2 * Dp), lambda i: (i, 0)),
        compiler_params=cparams,
    )(patches, w_bd, bconv2)

    stats = stats.reshape(num_tiles, 8, 2 * Dp)
    s1 = jnp.sum(stats[:, 0, :], axis=0)
    s2 = jnp.sum(stats[:, 1, :], axis=0)
    s1 = s1[:Dp] + s1[Dp:]                                # combine even/odd halves
    s2 = s2[:Dp] + s2[Dp:]
    if n_pad_pairs:
        # padded pairs have zero patches -> conv output == bias exactly.
        s1 = s1 - 2.0 * n_pad_pairs * bconv
        s2 = s2 - 2.0 * n_pad_pairs * bconv * bconv
    mu = s1 / BN_rows
    var = jnp.maximum(s2 / BN_rows - mu * mu, 0.0)        # biased (training) var
    inv = lax.rsqrt(var + eps)
    bn_scale = gamma * inv
    bn_shift = beta - mu * bn_scale
    scale2 = jnp.concatenate([bn_scale, bn_scale]).reshape(1, 2 * Dp)
    shift2 = jnp.concatenate([bn_shift, bn_shift]).reshape(1, 2 * Dp)

    # ---- pass 2: full stem body + attention pool, tiled over merged pairs.
    kernel2 = functools.partial(_stem_main_kernel, dp=Dp, mm_dtype=matmul_dtype)
    out = pl.pallas_call(
        kernel2,
        out_shape=jax.ShapeDtypeStruct((padded_pairs, Dp), jnp.float32),
        grid=(num_tiles,),
        in_specs=[row_spec, full2(w_bd), full2(bconv2), full2(scale2),
                  full2(shift2), full2(wfold), full2(bfold)],
        out_specs=pl.BlockSpec((TRH, Dp), lambda i: (i, 0)),
        compiler_params=cparams,
    )(patches, w_bd, bconv2, scale2, shift2, wfold, bfold)

    out = out[:n_pairs, :D].reshape(B, N // pool_size, D)
    return jnp.transpose(out, (0, 2, 1))                  # NCL: (B, D, N//2)


def stem_reference(x_ncl, params, *, pool_size=2, eps=1e-5):
    """Pure-JAX reference mirroring the PyTorch forward (training-mode BN)."""
    w_conv, b_conv = params["w_conv"], params["b_conv"]
    y = lax.conv_general_dilated(
        x_ncl, w_conv, window_strides=(1,), padding=[(7, 7)],
        dimension_numbers=("NCH", "OIH", "NCH")) + b_conv[None, :, None]
    mu = jnp.mean(y, axis=(0, 2), keepdims=True)
    var = jnp.mean((y - mu) ** 2, axis=(0, 2), keepdims=True)
    x1 = (y - mu) / jnp.sqrt(var + eps) * params["bn_gamma"][None, :, None] \
         + params["bn_beta"][None, :, None]
    for _ in range(2):
        x1 = jax.nn.sigmoid(1.702 * x1) * x1
    w1 = params["w_1x1"][:, :, 0]
    for _ in range(2):
        x1 = jnp.einsum("oc,bcn->bon", w1, x1) + params["b_1x1"][None, :, None]
    y = y + x1
    B, D, N = y.shape
    p = y.reshape(B, D, N // pool_size, pool_size)
    attn = jax.nn.softmax(2.0 * p, axis=-1)
    return (p * attn).sum(-1)


if __name__ == "__main__":
    B, N, D = 2, 16, 32                      # batch, seq length, hidden dim
    key = jax.random.PRNGKey(0)
    keys = jax.random.split(key, 7)
    params = {
        "w_conv": 0.1 * jax.random.normal(keys[0], (D, 4, 15), jnp.float32),
        "b_conv": 0.1 * jax.random.normal(keys[1], (D,), jnp.float32),
        "bn_gamma": 1.0 + 0.1 * jax.random.normal(keys[2], (D,), jnp.float32),
        "bn_beta": 0.1 * jax.random.normal(keys[3], (D,), jnp.float32),
        "w_1x1": 0.1 * jax.random.normal(keys[4], (D, D, 1), jnp.float32),
        "b_1x1": 0.1 * jax.random.normal(keys[5], (D,), jnp.float32),
    }
    x = jax.random.normal(keys[6], (B, 4, N), jnp.float32)   # NCL, like PyTorch

    ref = stem_reference(x, params)

    # default path: bf16 MXU operands, f32 accumulation (looser tolerance).
    out_bf16 = jax.block_until_ready(stem_forward(x, params))
    assert out_bf16.shape == (B, D, N // 2)
    np.testing.assert_allclose(np.asarray(out_bf16), np.asarray(ref),
                               rtol=5e-2, atol=5e-2)

    # f32 debug path: must match the reference tightly.
    out_f32 = jax.block_until_ready(
        stem_forward(x, params, matmul_dtype=jnp.float32))
    np.testing.assert_allclose(np.asarray(out_f32), np.asarray(ref),
                               rtol=1e-4, atol=1e-4)

    print("KERNEL_OK")
</pallas_src>

<mosaic_0001>
module attributes {stable_mosaic.version = 11 : i64} {
  func.func @_conv_stats_kernel(%arg0: i32, %arg1: memref<8x128xbf16, #tpu.memory_space<vmem>>, %arg2: memref<128x256xbf16, #tpu.memory_space<vmem>>, %arg3: memref<1x256xf32, #tpu.memory_space<vmem>>, %arg4: memref<8x256xf32, #tpu.memory_space<vmem>>) attributes {dimension_semantics = [#tpu.dimension_semantics<parallel>], iteration_bounds = array<i64: 2>, scalar_prefetch = 0 : i64, scratch_operands = 0 : i64, tpu.core_type = #tpu.core_type<tc>, window_params = [{transform_indices = @transform_0, window_bounds = array<i64: 8, 128>}, {pipeline_mode = #tpu.pipeline_mode<synchronous>, transform_indices = @transform_1, window_bounds = array<i64: 128, 256>}, {pipeline_mode = #tpu.pipeline_mode<synchronous>, transform_indices = @transform_2, window_bounds = array<i64: 1, 256>}, {transform_indices = @transform_3, window_bounds = array<i64: 8, 256>}]} {
    %c0 = arith.constant 0 : index
    %c0_0 = arith.constant 0 : index
    %0 = vector.load %arg1[%c0, %c0_0] : memref<8x128xbf16, #tpu.memory_space<vmem>>, vector<8x128xbf16>
    %c0_1 = arith.constant 0 : index
    %c0_2 = arith.constant 0 : index
    %1 = vector.load %arg2[%c0_1, %c0_2] : memref<128x256xbf16, #tpu.memory_space<vmem>>, vector<128x256xbf16>
    %cst = arith.constant dense<0.000000e+00> : vector<8x256xf32>
    %2 = tpu.matmul %0, %1, %cst {dimension_numbers = #tpu.dot_dimension_numbers<[1], [0], [0], [1], [0, 0, 1, 1], [], []>} : vector<8x128xbf16>, vector<128x256xbf16>, vector<8x256xf32> -> vector<8x256xf32>
    %c0_3 = arith.constant 0 : index
    %c0_4 = arith.constant 0 : index
    %3 = vector.load %arg3[%c0_3, %c0_4] : memref<1x256xf32, #tpu.memory_space<vmem>>, vector<1x256xf32>
    %4 = vector.broadcast %3 : vector<1x256xf32> to vector<8x256xf32>
    %5 = arith.addf %2, %4 : vector<8x256xf32>
    %cst_5 = arith.constant dense<0.000000e+00> : vector<256xf32>
    %6 = vector.multi_reduction <add>, %5, %cst_5 [0] : vector<8x256xf32> to vector<256xf32>
    %7 = vector.shape_cast %6 : vector<256xf32> to vector<1x256xf32>
    %c0_6 = arith.constant 0 : index
    %c0_7 = arith.constant 0 : index
    %8 = vector.load %arg4[%c0_6, %c0_7] : memref<8x256xf32, #tpu.memory_space<vmem>>, vector<1x256xf32>
    tpu.vector_store %arg4[%c0_6, %c0_7], %7 {strides = array<i32>} : memref<8x256xf32, #tpu.memory_space<vmem>>, vector<1x256xf32>,
    %9 = arith.mulf %5, %5 : vector<8x256xf32>
    %cst_8 = arith.constant dense<0.000000e+00> : vector<256xf32>
    %10 = vector.multi_reduction <add>, %9, %cst_8 [0] : vector<8x256xf32> to vector<256xf32>
    %11 = vector.shape_cast %10 : vector<256xf32> to vector<1x256xf32>
    %c1 = arith.constant 1 : index
    %c0_9 = arith.constant 0 : index
    %12 = vector.load %arg4[%c1, %c0_9] : memref<8x256xf32, #tpu.memory_space<vmem>>, vector<1x256xf32>
    tpu.vector_store %arg4[%c1, %c0_9], %11 {strides = array<i32>} : memref<8x256xf32, #tpu.memory_space<vmem>>, vector<1x256xf32>,
    return
  }
  func.func @transform_0(%arg0: i32) -> (i32, i32) {
    %c0_i32 = arith.constant 0 : i32
    %c0_i32_0 = arith.constant 0 : i32
    return %arg0, %c0_i32 : i32, i32
  }
  func.func @transform_1(%arg0: i32) -> (i32, i32) {
    %c0_i32 = arith.constant 0 : i32
    %c0_i32_0 = arith.constant 0 : i32
    %c0_i32_1 = arith.constant 0 : i32
    return %c0_i32, %c0_i32_0 : i32, i32
  }
  func.func @transform_2(%arg0: i32) -> (i32, i32) {
    %c0_i32 = arith.constant 0 : i32
    %c0_i32_0 = arith.constant 0 : i32
    %c0_i32_1 = arith.constant 0 : i32
    return %c0_i32, %c0_i32_0 : i32, i32
  }
  func.func @transform_3(%arg0: i32) -> (i32, i32) {
    %c0_i32 = arith.constant 0 : i32
    %c0_i32_0 = arith.constant 0 : i32
    return %arg0, %c0_i32 : i32, i32
  }
}

</mosaic_0001>

<bundles_post_ra>
// kernel: tpu_custom_call.1
= control target key start
LH: loop header
LB: loop body
LE: loop exit
PB: predicated region body
PF: predicated region fallthrough
CT: control target
= control target key end

     0   :  { %8 = vsyncpa [#allocation3], 0  ;;  %s996_s0 = inlined_call_operand.hbm [shape: bf16[16,128], index: 0, kind: input, shape index: {}]   ;;  %s997_s1 = inlined_call_operand.hbm [shape: bf16[128,256], index: 1, kind: input, shape index: {}]   ;;  %s998_s2 = inlined_call_operand.vmem [shape: f32[1,256], index: 2, kind: input, shape index: {}]   ;;  %s999_s3 = inlined_call_operand.hbm [shape: f32[16,256], index: 3, kind: output, shape index: {}]  }
   0x1   :  { %10 = vsyncpa [#allocation3 + $0x1], 0 }
   0x2   :  { %11 = vsyncpa [#allocation6], 0 }
   0x3   :  { %12 = vsyncpa [#allocation4], 0 }
   0x4   :  { %14 = vsyncpa [#allocation4 + $0x1], 0  ;;  %s793_s12 = smov 0   ;;  %s795_s13 = smov 0  }
   0x5   :  { %s797_s14 = smov 0   ;;  %s799_s15 = smov 0  }
   0x6 LB: > { %s814_s16 = sadd.s32 4294967295, %s764_s15   ;;  %s518_s17 = sadd.s32 4294967294, %s764_s15   ;;  %s764_s15 = sphi %s799_s15, %s1019_s15   ;;  %s760_s14 = sphi %s797_s14, %s1018_s14   ;;  %s756_s13 = sphi %s795_s13, %s1017_s13   ;;  %s752_s12 = sphi %s793_s12, %s1016_s12  }
   0x7   : > { %p40_p0 = scmp.ne.s32.totalorder %s756_s13, %s752_s12  ;;  %p1000_p1 = scmp.eq.s32.totalorder %s814_s16, 0 }
   0x8   : > { %p112_p3 = scmp.eq.s32.totalorder %s518_s17, 1  ;;  %p519_p5 = scmp.ge.s32.totalorder %s764_s15, 1 }
   0x9   : > { %p823_p4 = por %p1000_p1, %p40_p0  ;;  %p119_p7 = scmp.lt.s32.totalorder %s764_s15, 3 }
   0xa   : > { %p828_p6 = por %p112_p3, %p40_p0  ;;  %s766_s21 = smov [#allocation5]  }
   0xb   : > { %s1003_s18 = scalar_select %p823_p4, 1, 0 }
   0xc   : > { %s1004_s19 = scalar_select %p828_p6, 1, 0 }
   0xd   : > { %p833_p8 = pnand %p519_p5, %p119_p7  ;;  %s131_s22 = sshll.u32 %s766_s21, 4  ;;  %s837_s22 = int_to_ptr.vmem [resolvable:$true] %s131_s22 }
   0xe   : > { %s849_s24 = sadd.s32 1, %s764_s15   ;;  %s27_s25 = sadd.s32 1, %s760_s14 }
   0xf   : > { %s1005_s20 = scalar_select %p833_p8, 1, 0 }
  0x10   : > { %p559_p9 = pneg %p833_p8  ;;  %s24_s26 = ssub.s32 %s764_s15, %s849_s24 }
  0x11   : > { %s636_s29 = scalar_lea.hbm %s997_s1, 2048 }
  0x12   : > { %p844_p11 = pnand %p559_p9, %p1000_p1  ;;  %p637_p12 = scmp.ne.s32.totalorder %s997_s1, %s636_s29 }
  0x13   : > { %p643_p5 = scmp.lt.u32.totalorder %s636_s29, %s997_s1 }
  0x14   : > { %p638_p13 = pneg %p844_p11 }
  0x16   : > { %p639_p0 = pnand %p638_p13, %p637_p12 }
  0x18   : > { %p640_p3 = pneg %p639_p0 }
  0x1a   : > { %p645_p7 = pnand %p643_p5, %p640_p3 }
  0x1c   : > { %648 = shalt.err (!%p645_p7)
}
  0x1d   : > { %s649_s7 = scalar_lea.vmem %s837_s22, 2048  ;;  %p657_p2 = scmp.lt.s32.totalorder %s837_s22, %s837_s22 }
  0x1e   : > { %p650_p9 = scmp.ne.s32.totalorder %s837_s22, %s649_s7  ;;  %p658_p6 = scmp.lt.s32.totalorder %s649_s7, %s649_s7 }
  0x20   : > { %p652_p10 = pnand %p650_p9, %p638_p13  ;;  %p659_p4 = por %p658_p6, %p657_p2 }
  0x22   : > { %p653_p1 = pneg %p652_p10 }
  0x24   : > { %p660_p8 = pnand %p659_p4, %p653_p1 }
  0x26   : > { %663 = shalt.err (!%p660_p8)
}
  0x27   : > { %s767_s8 = smov 128   ;;  %s768_s9 = smov 8  }
  0x28   : > { %562 = dma.hbm_to_vmem [thread:$0]  (!%p844_p11), %s997_s1, 2048, %s837_s22, [#allocation6], %s767_s8, %s767_s8, %s768_s9  }
  0x29   : > { %p25_p2 = scmp.eq.s32.totalorder %s24_s26, 0  ;;  %p34_p1 = scmp.ne.s32.totalorder %s760_s14, %s756_s13 }
  0x2a   : > { %p35_p4 = scmp.eq.s32.totalorder %s764_s15, 0  ;;  %p572_p6 = scmp.lt.s32.totalorder %s764_s15, 2 }
  0x2b   : > { %s880_s17 = scalar_select %p25_p2, %s760_s14, %s27_s25  }
  0x2c   : > { %p36_p8 = por %p35_p4, %p34_p1  ;;  %p1007_p10 = scmp.eq.s32.totalorder %s814_s16, 1 }
  0x2d   : > { %s148_s27 = sand.u32 1, %s760_s14   ;;  %s523_s28 = sshll.u32 %s764_s15, 6 }
  0x2e   : > { %p884_p12 = por %p1007_p10, %p34_p1  ;;  %s522_s29 = sshll.u32 %s148_s27, 2 }
  0x2f   : > { %s893_s4 = scalar_lea.hbm %s996_s0, %s523_s28  ;;  %s152_s22 = scalar_lea.vmem [#allocation2], %s522_s29 }
  0x30   : > { %s159_s25 = sshll.u32 %s152_s22, 4  ;;  %p895_p11 = pnand %p572_p6, %p36_p8  ;;  %s899_s25 = int_to_ptr.vmem [resolvable:$true] %s159_s25 }
  0x31   : > { %s149_s5 = scalar_lea.sflag [#allocation3], %s148_s27  ;;  %s664_s6 = scalar_lea.hbm %s893_s4, 64 }
  0x32   : > { %p665_p13 = scmp.ne.s32.totalorder %s893_s4, %s664_s6  ;;  %p666_p0 = pneg %p895_p11 }
  0x33   : > { %s669_s9 = scalar_lea.hbm %s996_s0, 128  ;;  %p670_p7 = scmp.lt.u32.totalorder %s893_s4, %s996_s0 }
  0x34   : > { %p667_p3 = pnand %p666_p0, %p665_p13  ;;  %p671_p9 = scmp.lt.u32.totalorder %s669_s9, %s664_s6 }
  0x35   : > { %p673_p1 = scmp.lt.u32.totalorder %s664_s6, %s893_s4 }
  0x36   : > { %p668_p5 = pneg %p667_p3  ;;  %p672_p2 = por %p671_p9, %p670_p7 }
  0x38   : > { %p674_p4 = por %p673_p1, %p672_p2 }
  0x3a   : > { %p675_p6 = pnand %p674_p4, %p668_p5 }
  0x3c   : > { %678 = shalt.err (!%p675_p6)
}
  0x3d   : > { %s679_s27 = scalar_lea.vmem %s899_s25, 64  ;;  %s769_s28 = smov [#allocation2]  }
  0x3e   : > { %p680_p8 = scmp.ne.s32.totalorder %s899_s25, %s679_s27  ;;  %s684_s29 = sshll.u32 %s769_s28, 4  ;;  %s685_s29 = int_to_ptr.vmem [resolvable:$false] %s684_s29 }
  0x3f   : > { %s686_s23 = scalar_lea.vmem %s685_s29, 128  ;;  %p687_p3 = scmp.lt.s32.totalorder %s899_s25, %s685_s29 }
  0x40   : > { %p682_p10 = pnand %p680_p8, %p666_p0  ;;  %p688_p7 = scmp.lt.s32.totalorder %s686_s23, %s679_s27 }
  0x42   : > { %p683_p13 = pneg %p682_p10  ;;  %p689_p9 = por %p688_p7, %p687_p3 }
  0x44   : > { %p690_p2 = pnand %p689_p9, %p683_p13 }
  0x46   : > { %693 = shalt.err (!%p690_p2)
}
  0x47   : > { %566 = dma.hbm_to_vmem [thread:$0]  (!%p895_p11), %s893_s4, 64, %s899_s25, %s149_s5  }
  0x48   : > { %p1010_p5 = scmp.ne.s32.totalorder %s1005_s20, 0 }
  0x49   : > { %s929_s30 = sand.u32 (!%p1010_p5), 1, %s756_s13   ;;  %p1011_p0 = scmp.ne.s32.totalorder (!%p1010_p5), %s1003_s18, 0 }
  0x4a   : > { %168 = sbr.rel (%p1010_p5) target bundleno = 367 (0x16f), region = 32  ;;  %s525_s22 = sshll.u32 (!%p1010_p5), %s929_s30, 2 }
  0x4b   : > { %s171_s6 = scalar_lea.sflag (!%p1010_p5), [#allocation3], %s929_s30  ;;  %s933_s7 = scalar_lea.vmem (!%p1010_p5), [#allocation2], %s525_s22 }
  0x51   : > { %739 = dma.done.wait (%p1011_p0), %s171_s6, 64  }
  0x52   : > { %741 = vsyncadd (%p1011_p0), %s171_s6, 4294967232  ;;  %p1012_p11 = scmp.eq.s32.totalorder %s814_s16, 0 }
  0x54   : > { %743 = dma.done.wait (%p1012_p11), [#allocation6], 2048   ;;  %p1013_p1 = pmov %p1012_p11 }
  0x55   : > { %v770_v0 = vmov 0   ;;  %v612_v1 = vld [vmem:[#allocation5 + $0x4] ss:$8 sps:$4 sm:$0xff]   ;;  %v614_v2 = vld [vmem:[#allocation5] ss:$8 sps:$4 sm:$0xff]   ;;  %v221_v18 = vlaneseq  ;;  %s527_s4 = sshll.u32 %s929_s30, 4 }
  0x56   : > { %745 = vsyncadd (%p1013_p1), [#allocation6], 4294965248  ;;  %343 = vmatprep.mubr.bf16.mxu0 %v770_v0  ;;  %311 = vmatprep.subr.bf16.mxu0 %v612_v1  ;;  %v615_v3 = vld [vmem:[#allocation5 + $0x14] ss:$8 sps:$4 sm:$0xff]   ;;  %v617_v4 = vld [vmem:[#allocation5 + $0x10] ss:$8 sps:$4 sm:$0xff]  }
  0x57   : > { %312 = vmatpush1.bf16.msra.mxu0 %v614_v2  ;;  %v618_v5 = vld [vmem:[#allocation5 + $0x24] ss:$8 sps:$4 sm:$0xff]   ;;  %v620_v6 = vld [vmem:[#allocation5 + $0x20] ss:$8 sps:$4 sm:$0xff]   ;;  %v621_v7 = vld [vmem:[#allocation5 + $0x34] ss:$8 sps:$4 sm:$0xff]  }
  0x58   : > { %313 = vmatprep.subr.bf16.mxu0 %v615_v3  ;;  %v623_v8 = vld [vmem:[#allocation5 + $0x30] ss:$8 sps:$4 sm:$0xff]   ;;  %v624_v9 = vld [vmem:[#allocation5 + $0x44] ss:$8 sps:$4 sm:$0xff]   ;;  %v626_v10 = vld [vmem:[#allocation5 + $0x40] ss:$8 sps:$4 sm:$0xff]  }
  0x59   : > { %v627_v11 = vld [vmem:[#allocation5 + $0x54] ss:$8 sps:$4 sm:$0xff]   ;;  %v629_v12 = vld [vmem:[#allocation5 + $0x50] ss:$8 sps:$4 sm:$0xff]   ;;  %v630_v13 = vld [vmem:[#allocation5 + $0x64] ss:$8 sps:$4 sm:$0xff]  }
  0x5a   : > { %v632_v14 = vld [vmem:[#allocation5 + $0x60] ss:$8 sps:$4 sm:$0xff]   ;;  %v633_v15 = vld [vmem:[#allocation5 + $0x74] ss:$8 sps:$4 sm:$0xff]   ;;  %v635_v16 = vld [vmem:[#allocation5 + $0x70] ss:$8 sps:$4 sm:$0xff]  }
  0x5b   : > { %314 = vmatpush1.bf16.msra.mxu0 %v617_v4  ;;  %v202_v17 = vld [vmem:[%s933_s7] sm:$0xf]  ;;  %v222_v19 = vshrl.u32 %v221_v18, 7  ;;  %v771_v37 = vmov 1966171168   ;;  %vm384_vm0 = vcmp.lt.s32.totalorder %v221_v18, 256 }
  0x5c   : > { %315 = vmatprep.subr.bf16.mxu0 %v618_v5  ;;  %v219_v21 = vld [vmem:[%s998_s2] sm:$0x3]  ;;  %v368_v38 = vunpack.c.l.s4 %v771_v37  ;;  %s550_s25 = sshll.u32 %s814_s16, 8  ;;  %s200_s26 = scalar_lea.vmem [#allocation7], %s527_s4 }
  0x5d   : > { %v223_v20 = vsub.s32 0, %v222_v19  ;;  %v227_v22 = vsub.s32 1, %v222_v19  ;;  %s438_s5 = sshll.u32 %s200_s26, 4  ;;  %s952_s10 = scalar_lea.hbm %s999_s3, %s550_s25  ;;  %s954_s5 = int_to_ptr.vmem [resolvable:$true] %s438_s5 }
  0x5e   : > { %v369_v47 = vunpack.c.0.s8 %v368_v38  ;;  %s424_s11 = scalar_lea.sflag [#allocation4], %s929_s30  ;;  %s694_s27 = scalar_lea.vmem %s954_s5, 256 }
  0x5f   : > { %316 = vmatpush1.bf16.msra.mxu0 %v620_v6  ;;  %v224_v23 = vrot.slane %v219_v21, %v223_v20  ;;  %v228_v24 = vrot.slane %v219_v21, %v227_v22  ;;  %p695_p4 = scmp.ne.s32.totalorder %s954_s5, %s694_s27  ;;  %s772_s16 = smov [#allocation7]  }
  0x60   : > { %317 = vmatprep.subr.bf16.mxu0 %v621_v7  ;;  %v372_v56 = vsub.s32 %v369_v47, %v222_v19  ;;  %s698_s28 = sshll.u32 %s772_s16, 4  ;;  %s699_s28 = int_to_ptr.vmem [resolvable:$false] %s698_s28 }
  0x61   : > { %p696_p6 = pnand %p695_p4, %p884_p12  ;;  %s700_s29 = scalar_lea.vmem %s699_s28, 512 }
  0x62   : > { %p701_p10 = scmp.lt.s32.totalorder %s954_s5, %s699_s28  ;;  %p702_p13 = scmp.lt.s32.totalorder %s700_s29, %s694_s27 }
  0x63   : > { %318 = vmatpush1.bf16.msra.mxu0 %v623_v8  ;;  %p697_p8 = pneg %p696_p6 }
  0x64   : > { %319 = vmatprep.subr.bf16.mxu0 %v624_v9  ;;  %p703_p3 = por %p702_p13, %p701_p10 }
  0x66   : > { %p704_p7 = pnand %p703_p3, %p697_p8 }
  0x67   : > { %320 = vmatpush1.bf16.msra.mxu0 %v626_v10 }
  0x68   : > { %321 = vmatprep.subr.bf16.mxu0 %v627_v11 }
  0x6b   : > { %322 = vmatpush1.bf16.msra.mxu0 %v629_v12 }
  0x6c   : > { %323 = vmatprep.subr.bf16.mxu0 %v630_v13 }
  0x6f   : > { %324 = vmatpush1.bf16.msra.mxu0 %v632_v14 }
  0x70   : > { %325 = vmatprep.subr.bf16.mxu0 %v633_v15 }
  0x73   : > { %326 = vmatpush1.bf16.msra.mxu0 %v635_v16 }
  0x76   : > { %344 = vmatmul.mubr.bf16.vlgmr.msra.gmra.mrb[0].mxu0 %v202_v17 }
 0x149   : > { %v345_v25 = vpop.f32.mrb[0].mxu0 }
 0x14a   : > { %v346_v26 = vadd.f32 %v345_v25, %v224_v23  ;;  %v347_v27 = vpop.f32.mrb[1].mxu0 }
 0x14b   : > { %v348_v28 = vadd.f32 %v347_v27, %v228_v24  ;;  %v349_v29 = vpop.f32.mrb[2].mxu0 }
 0x14c   : > { %v352_v30 = vrot.slane %v346_v26, 4  ;;  %v388_v31 = vmul.f32 %v346_v26, %v346_v26  ;;  %v350_v32 = vpop.f32.mrb[3].mxu0 }
 0x14d   : > { %v358_v33 = vrot.slane %v348_v28, 4  ;;  %v389_v34 = vmul.f32 %v348_v28, %v348_v28 }
 0x14e   : > { %v353_v35 = vadd.f32 %v352_v30, %v346_v26  ;;  %v390_v36 = vrot.slane %v388_v31, 4 }
 0x14f   : > { %v359_v39 = vadd.f32 %v358_v33, %v348_v28  ;;  %v396_v40 = vrot.slane %v389_v34, 4 }
 0x150   : > { %v354_v41 = vrot.slane %v353_v35, 2  ;;  %v391_v42 = vadd.f32 %v390_v36, %v388_v31 }
 0x151   : > { %v360_v43 = vrot.slane %v359_v39, 2  ;;  %v397_v44 = vadd.f32 %v396_v40, %v389_v34 }
 0x152   : > { %v355_v45 = vadd.f32 %v354_v41, %v353_v35  ;;  %v392_v46 = vrot.slane %v391_v42, 2 }
 0x153   : > { %v361_v48 = vadd.f32 %v360_v43, %v359_v39  ;;  %v398_v49 = vrot.slane %v397_v44, 2 }
 0x154   : > { %v356_v50 = vrot.slane %v355_v45, 1  ;;  %v393_v51 = vadd.f32 %v392_v46, %v391_v42 }
 0x155   : > { %v362_v52 = vrot.slane %v361_v48, 1  ;;  %v399_v53 = vadd.f32 %v398_v49, %v397_v44 }
 0x156   : > { %v357_v54 = vadd.f32 %v356_v50, %v355_v45  ;;  %v394_v55 = vrot.slane %v393_v51, 1 }
 0x157   : > { %v363_v57 = vadd.f32 %v362_v52, %v361_v48  ;;  %v400_v58 = vrot.slane %v399_v53, 1 }
 0x158   : > { %v395_v59 = vadd.f32 %v394_v55, %v393_v51 }
 0x159   : > { %v366_v60 = vcombine.low %v357_v54, %v363_v57  ;;  %v401_v61 = vadd.f32 %v400_v58, %v399_v53 }
 0x15b   : > { %v373_v62 = vrot.slane %v366_v60, %v372_v56  ;;  %v404_v63 = vcombine.low %v395_v59, %v401_v61 }
 0x15d   : > { %v380_v0 = vrot.slane %v373_v62, %v372_v56  ;;  %v411_v1 = vrot.slane %v404_v63, %v372_v56 }
 0x15f   : > { %386 = vst.msk [vmem:[%s200_s26] ss:$8 sm:$0x3] %vm384_vm0, %v380_v0  ;;  %v418_v2 = vrot.slane %v411_v1, %v372_v56 }
 0x161   : > { %544 = vst.msk [vmem:[%s200_s26 + $0x1] ss:$8 sm:$0x3] %vm384_vm0, %v418_v2 }
 0x162   : > { %707 = shalt.err (!%p704_p7)
}
 0x163   : > { %s708_s23 = scalar_lea.hbm %s952_s10, 256  ;;  %s712_s6 = scalar_lea.hbm %s999_s3, 512 }
 0x164   : > { %p709_p9 = scmp.ne.s32.totalorder %s952_s10, %s708_s23  ;;  %p713_p0 = scmp.lt.u32.totalorder %s952_s10, %s999_s3 }
 0x165   : > { %p714_p11 = scmp.lt.u32.totalorder %s712_s6, %s708_s23  ;;  %p716_p4 = scmp.lt.u32.totalorder %s708_s23, %s952_s10 }
 0x166   : > { %p710_p2 = pnand %p709_p9, %p884_p12 }
 0x167   : > { %p715_p1 = por %p714_p11, %p713_p0 }
 0x168   : > { %p711_p5 = pneg %p710_p2 }
 0x169   : > { %p717_p6 = por %p716_p4, %p715_p1 }
 0x16b   : > { %p718_p8 = pnand %p717_p6, %p711_p5 }
 0x16d   : > { %721 = shalt.err (!%p718_p8)
}
 0x16e   : > { %557 = dma.vmem_to_hbm [thread:$0]  (%p884_p12), %s954_s5, 256, %s952_s10, %s424_s11  }
 0x16f PF: > { %s450_s20 = sand.u32 1, %s752_s12   ;;  %p1014_p10 = scmp.ne.s32.totalorder %s1004_s19, 0 }
 0x170   : > { %p1015_p13 = scmp.ge.s32.totalorder %s764_s15, 2  ;;  %s451_s4 = scalar_lea.sflag [#allocation4], %s450_s20 }
 0x172   : > { %p568_p3 = pnand %p1015_p13, %p1014_p10 }
 0x174   : > { %747 = dma.done.wait (!%p568_p3), %s451_s4, 256  }
 0x175   : > { %749 = vsyncadd (!%p568_p3), %s451_s4, 4294967040  ;;  %p17_p7 = scmp.ge.s32.totalorder %s849_s24, 4   ;;  %s1016_s12 = smov %s756_s13 }
 0x176   : > { %s1017_s13 = smov %s760_s14  ;;  %s1018_s14 = smov %s880_s17 }
 0x177   : > { %s1019_s15 = smov %s849_s24  ;;  %19 = sbr.rel (!%p17_p7) target bundleno = 6 (0x6), region = 82 }
 0x17e   :  { %456 = vsyncpa [#allocation3], 1 }
 0x17f   :  { %458 = vsyncpa [#allocation3 + $0x1], 1 }
 0x180   :  { %459 = vsyncpa [#allocation6], 1 }
 0x181   :  { %460 = vsyncpa [#allocation4], 1 }
 0x182   :  { %462 = vsyncpa [#allocation4 + $0x1], 1 }

</bundles_post_ra>
